<compile_context>
chip_gen: v7x
topology: tpu7x:2x2x1
jax: 0.10.0
libtpu: 0.0.40
codegen_flags: <defaults>
</compile_context>

<pallas_src>
import functools

import jax
import jax.numpy as jnp
from jax.experimental import pallas as pl
from jax.experimental.pallas import tpu as pltpu


def _round_up(x, m):
    return ((x + m - 1) // m) * m


# ----------------------------- Pallas kernel -------------------------------

def _make_gnn_kernel(B, Fp):
    """Kernel factory; B (batch) and Fp (padded feature width) are trace-time
    constants.  Activations are node-major with batch folded into lanes."""

    def kernel(a_ref, x_ref, w1_ref, b1_ref, w2_ref, b2_ref, o_ref,
               t_ref, h_ref):
        # a_ref  : [Np, Np]     bf16  padded normalized adjacency (shared)
        # x_ref  : [Np, B*Fp]   bf16  node-major features, batch in lane dim
        # w1/w2  : [Fp, Fp]     bf16  padded weights, already [in, out]
        # b1/b2  : [1, B*Fp]    f32   bias tiled across the batch lane blocks
        # o_ref  : [Np, B*Fp]   f32   lane-dense output slab
        # t_ref  : [Np, B*Fp]   bf16  scratch: transform outputs
        # h_ref  : [Np, B*Fp]   bf16  scratch: post-ReLU hidden activations
        a = a_ref[...]
        b1 = b1_ref[...]                     # hoisted VPU broadcast operands
        b2 = b2_ref[...]

        # ---- layer 1: feature transform per 128-aligned batch lane block ----
        for b in range(B):                   # B is tiny & static
            lo, hi = b * Fp, (b + 1) * Fp
            t_ref[:, lo:hi] = jnp.dot(
                x_ref[:, lo:hi], w1_ref[...],
                preferred_element_type=jnp.float32).astype(t_ref.dtype)

        # ---- layer 1: aggregation over the WHOLE batch in one matmul ----
        h_ref[...] = jnp.maximum(
            jnp.dot(a, t_ref[...], preferred_element_type=jnp.float32) + b1,
            0.0).astype(h_ref.dtype)
        # TODO(synk): nn.Dropout is identity in eval mode; a training-mode
        # kernel would mask here with pltpu.prng_seed / pltpu.prng_random_bits.

        # ---- layer 2: feature transform ----
        for b in range(B):
            lo, hi = b * Fp, (b + 1) * Fp
            t_ref[:, lo:hi] = jnp.dot(
                h_ref[:, lo:hi], w2_ref[...],
                preferred_element_type=jnp.float32).astype(t_ref.dtype)

        # ---- layer 2: aggregation + bias + ReLU ----
        o_ref[...] = jnp.maximum(
            jnp.dot(a, t_ref[...], preferred_element_type=jnp.float32) + b2,
            0.0).astype(o_ref.dtype)

    return kernel


@jax.jit
def gnn_forward(x, a_norm, w1, b1, w2, b2):
    """x: [B, N, Fin] f32.  a_norm: [N, N] f32.  w1/w2: [in, out].
    Returns [B, N, Fout] f32."""
    B, N, Fin = x.shape
    Fout1 = w1.shape[1]
    Fout2 = w2.shape[1]

    Np = _round_up(N, 16)                    # bf16 sublane packing only
    Fp = _round_up(max(Fin, Fout1, Fout2), 128)

    bf16 = jnp.bfloat16

    # Node-major activation slab: [Np, B, Fp] -> [Np, B*Fp] (batch in lanes).
    x_nm = jnp.zeros((Np, B, Fp), jnp.float32).at[:N, :, :Fin].set(
        jnp.transpose(x, (1, 0, 2)))
    x2d = x_nm.reshape(Np, B * Fp).astype(bf16)

    a_p = jnp.zeros((Np, Np), jnp.float32).at[:N, :N].set(a_norm).astype(bf16)
    w1_p = jnp.zeros((Fp, Fp), jnp.float32).at[:Fin, :Fout1].set(w1).astype(bf16)
    w2_p = jnp.zeros((Fp, Fp), jnp.float32).at[:Fout1, :Fout2].set(w2).astype(bf16)
    b1_p = jnp.tile(jnp.zeros((1, Fp), jnp.float32).at[:, :Fout1].set(b1), (1, B))
    b2_p = jnp.tile(jnp.zeros((1, Fp), jnp.float32).at[:, :Fout2].set(b2), (1, B))

    kernel = _make_gnn_kernel(B, Fp)

    out2d = pl.pallas_call(
        kernel,
        out_shape=jax.ShapeDtypeStruct((Np, B * Fp), jnp.float32),
        grid_spec=pltpu.PrefetchScalarGridSpec(
            num_scalar_prefetch=0,
            grid=(1,),                                   # single fused step
            in_specs=[
                pl.BlockSpec((Np, Np), lambda i: (0, 0)),        # A_norm
                pl.BlockSpec((Np, B * Fp), lambda i: (0, 0)),    # x (node-major)
                pl.BlockSpec((Fp, Fp), lambda i: (0, 0)),        # w1
                pl.BlockSpec((1, B * Fp), lambda i: (0, 0)),     # b1 (tiled)
                pl.BlockSpec((Fp, Fp), lambda i: (0, 0)),        # w2
                pl.BlockSpec((1, B * Fp), lambda i: (0, 0)),     # b2 (tiled)
            ],
            out_specs=pl.BlockSpec((Np, B * Fp), lambda i: (0, 0)),
            scratch_shapes=[pltpu.VMEM((Np, B * Fp), bf16),      # t (transform)
                            pltpu.VMEM((Np, B * Fp), bf16)],     # h (hidden)
        ),
        compiler_params=pltpu.CompilerParams(
            dimension_semantics=("arbitrary",),
            vmem_limit_bytes=32 * 1024 * 1024),
    )(a_p, x2d, w1_p, b1_p, w2_p, b2_p)

    # De-layout: [Np, B*Fp] -> [B, N, Fout]
    out = out2d.reshape(Np, B, Fp).transpose(1, 0, 2)[:, :N, :Fout2]
    return out


# ------------------------------- JAX glue -----------------------------------

def build_gcn_adjacency(edge_index, edge_weight, num_nodes):
    """Dense D^-1/2 (A + I) D^-1/2 with GCNConv's default self-loop weight 1.

    edge_index: [2, E] int32 (row = source, col = target)
    edge_weight: [E] float32
    """
    row, col = edge_index[0], edge_index[1]
    a = jnp.zeros((num_nodes, num_nodes), jnp.float32)
    a = a.at[col, row].add(edge_weight)                   # message j -> i
    a = a + jnp.eye(num_nodes, dtype=jnp.float32)         # self loops, weight 1
    deg = a.sum(axis=1)                                    # weighted in-degree
    deg_inv_sqrt = jnp.where(deg > 0, 1.0 / jnp.sqrt(deg), 0.0)
    return deg_inv_sqrt[:, None] * a * deg_inv_sqrt[None, :]


def reference_forward_f32(x, a_norm, w1, b1, w2, b2):
    h = jnp.maximum(jnp.einsum("nm,bmf->bnf", a_norm, x @ w1) + b1, 0.0)
    h = jnp.maximum(jnp.einsum("nm,bmf->bnf", a_norm, h @ w2) + b2, 0.0)
    return h


def reference_forward_bf16(x, a_norm, w1, b1, w2, b2):
    """Same bf16-matmul / f32-accumulate arithmetic as the kernel."""
    bf = jnp.bfloat16
    xb, ab = x.astype(bf), a_norm.astype(bf)
    w1b, w2b = w1.astype(bf), w2.astype(bf)
    t = jnp.einsum("bnf,fo->bno", xb, w1b,
                   preferred_element_type=jnp.float32).astype(bf)
    h = jnp.maximum(jnp.einsum("nm,bmf->bnf", ab, t,
                               preferred_element_type=jnp.float32) + b1,
                    0.0).astype(bf)
    t = jnp.einsum("bnf,fo->bno", h, w2b,
                   preferred_element_type=jnp.float32).astype(bf)
    return jnp.maximum(jnp.einsum("nm,bmf->bnf", ab, t,
                                  preferred_element_type=jnp.float32) + b2,
                       0.0)


# --------------------------------- main --------------------------------------

if __name__ == "__main__":
    B, N, E = 2, 16, 40
    in_dim = 8   # use_gcn path: both convs map in_dim -> in_dim

    key = jax.random.PRNGKey(0)
    k_x, k_src, k_dst, k_w, k_w1, k_w2, k_b1, k_b2 = jax.random.split(key, 8)

    # Inputs (shapes consistent with the module: x [B, N, F], node_dim=1)
    x = jax.random.normal(k_x, (B, N, in_dim), jnp.float32)
    edge_index = jnp.stack([
        jax.random.randint(k_src, (E,), 0, N),
        jax.random.randint(k_dst, (E,), 0, N),
    ]).astype(jnp.int32)                                      # [2, E]
    edge_attr = jax.random.uniform(k_w, (E, 1), jnp.float32)  # flattened in fwd

    # Parameters (torch GCNConv: lin weight [out, in], bias [out])
    w1_torch = 0.1 * jax.random.normal(k_w1, (in_dim, in_dim), jnp.float32)
    w2_torch = 0.1 * jax.random.normal(k_w2, (in_dim, in_dim), jnp.float32)
    b1 = 0.1 * jax.random.normal(k_b1, (1, in_dim), jnp.float32)
    b2 = 0.1 * jax.random.normal(k_b2, (1, in_dim), jnp.float32)
    w1 = w1_torch.T   # pre-transpose to [in, out] so the kernel does X @ W
    w2 = w2_torch.T

    # One-time O(N^2) glue (constant across forwards for a fixed graph).
    a_norm = build_gcn_adjacency(edge_index, edge_attr.flatten(), N)

    out = gnn_forward(x, a_norm, w1, b1, w2, b2)
    out = jax.block_until_ready(out)
    assert out.shape == (B, N, in_dim)

    # Tight check against a reference using identical bf16-matmul arithmetic.
    ref_bf = reference_forward_bf16(x, a_norm, w1, b1, w2, b2)
    assert jnp.allclose(out, ref_bf, atol=2e-3, rtol=2e-3), \
        "mismatch vs bf16-matched reference"

    # Looser check against the pure-f32 reference (bf16 matmul rounding only).
    ref_f32 = reference_forward_f32(x, a_norm, w1, b1, w2, b2)
    assert jnp.allclose(out, ref_f32, atol=3e-2, rtol=3e-2), \
        "mismatch vs f32 reference"

    print("KERNEL_OK")
</pallas_src>

<mosaic_0001>
module attributes {stable_mosaic.version = 11 : i64} {
  func.func @kernel(%arg0: i32, %arg1: memref<16x16xbf16, #tpu.memory_space<vmem>>, %arg2: memref<16x256xbf16, #tpu.memory_space<vmem>>, %arg3: memref<128x128xbf16, #tpu.memory_space<vmem>>, %arg4: memref<1x256xf32, #tpu.memory_space<vmem>>, %arg5: memref<128x128xbf16, #tpu.memory_space<vmem>>, %arg6: memref<1x256xf32, #tpu.memory_space<vmem>>, %arg7: memref<16x256xf32, #tpu.memory_space<vmem>>, %arg8: memref<16x256xbf16, #tpu.memory_space<vmem>>, %arg9: memref<16x256xbf16, #tpu.memory_space<vmem>>) attributes {dimension_semantics = [#tpu.dimension_semantics<arbitrary>], iteration_bounds = array<i64: 1>, scalar_prefetch = 0 : i64, scratch_operands = 2 : i64, tpu.core_type = #tpu.core_type<tc>, window_params = [{pipeline_mode = #tpu.pipeline_mode<synchronous>, transform_indices = @transform_0, window_bounds = array<i64: 16, 16>}, {pipeline_mode = #tpu.pipeline_mode<synchronous>, transform_indices = @transform_1, window_bounds = array<i64: 16, 256>}, {pipeline_mode = #tpu.pipeline_mode<synchronous>, transform_indices = @transform_2, window_bounds = array<i64: 128, 128>}, {pipeline_mode = #tpu.pipeline_mode<synchronous>, transform_indices = @transform_3, window_bounds = array<i64: 1, 256>}, {pipeline_mode = #tpu.pipeline_mode<synchronous>, transform_indices = @transform_4, window_bounds = array<i64: 128, 128>}, {pipeline_mode = #tpu.pipeline_mode<synchronous>, transform_indices = @transform_5, window_bounds = array<i64: 1, 256>}, {pipeline_mode = #tpu.pipeline_mode<synchronous>, transform_indices = @transform_6, window_bounds = array<i64: 16, 256>}]} {
    %c0 = arith.constant 0 : index
    %c0_0 = arith.constant 0 : index
    %0 = vector.load %arg1[%c0, %c0_0] : memref<16x16xbf16, #tpu.memory_space<vmem>>, vector<16x16xbf16>
    %c0_1 = arith.constant 0 : index
    %c0_2 = arith.constant 0 : index
    %1 = vector.load %arg4[%c0_1, %c0_2] : memref<1x256xf32, #tpu.memory_space<vmem>>, vector<1x256xf32>
    %c0_3 = arith.constant 0 : index
    %c0_4 = arith.constant 0 : index
    %2 = vector.load %arg6[%c0_3, %c0_4] : memref<1x256xf32, #tpu.memory_space<vmem>>, vector<1x256xf32>
    %c0_5 = arith.constant 0 : index
    %c0_6 = arith.constant 0 : index
    %3 = vector.load %arg2[%c0_5, %c0_6] : memref<16x256xbf16, #tpu.memory_space<vmem>>, vector<16x128xbf16>
    %c0_7 = arith.constant 0 : index
    %c0_8 = arith.constant 0 : index
    %4 = vector.load %arg3[%c0_7, %c0_8] : memref<128x128xbf16, #tpu.memory_space<vmem>>, vector<128x128xbf16>
    %cst = arith.constant dense<0.000000e+00> : vector<16x128xf32>
    %5 = tpu.matmul %3, %4, %cst {dimension_numbers = #tpu.dot_dimension_numbers<[1], [0], [0], [1], [0, 0, 1, 1], [], []>} : vector<16x128xbf16>, vector<128x128xbf16>, vector<16x128xf32> -> vector<16x128xf32>
    %6 = arith.truncf %5 : vector<16x128xf32> to vector<16x128xbf16>
    %c0_9 = arith.constant 0 : index
    %c0_10 = arith.constant 0 : index
    %7 = vector.load %arg8[%c0_9, %c0_10] : memref<16x256xbf16, #tpu.memory_space<vmem>>, vector<16x128xbf16>
    tpu.vector_store %arg8[%c0_9, %c0_10], %6 {strides = array<i32>} : memref<16x256xbf16, #tpu.memory_space<vmem>>, vector<16x128xbf16>,
    %c0_11 = arith.constant 0 : index
    %c128 = arith.constant 128 : index
    %8 = vector.load %arg2[%c0_11, %c128] : memref<16x256xbf16, #tpu.memory_space<vmem>>, vector<16x128xbf16>
    %c0_12 = arith.constant 0 : index
    %c0_13 = arith.constant 0 : index
    %9 = vector.load %arg3[%c0_12, %c0_13] : memref<128x128xbf16, #tpu.memory_space<vmem>>, vector<128x128xbf16>
    %cst_14 = arith.constant dense<0.000000e+00> : vector<16x128xf32>
    %10 = tpu.matmul %8, %9, %cst_14 {dimension_numbers = #tpu.dot_dimension_numbers<[1], [0], [0], [1], [0, 0, 1, 1], [], []>} : vector<16x128xbf16>, vector<128x128xbf16>, vector<16x128xf32> -> vector<16x128xf32>
    %11 = arith.truncf %10 : vector<16x128xf32> to vector<16x128xbf16>
    %c0_15 = arith.constant 0 : index
    %c128_16 = arith.constant 128 : index
    %12 = vector.load %arg8[%c0_15, %c128_16] : memref<16x256xbf16, #tpu.memory_space<vmem>>, vector<16x128xbf16>
    tpu.vector_store %arg8[%c0_15, %c128_16], %11 {strides = array<i32>} : memref<16x256xbf16, #tpu.memory_space<vmem>>, vector<16x128xbf16>,
    %c0_17 = arith.constant 0 : index
    %c0_18 = arith.constant 0 : index
    %13 = vector.load %arg8[%c0_17, %c0_18] : memref<16x256xbf16, #tpu.memory_space<vmem>>, vector<16x256xbf16>
    %cst_19 = arith.constant dense<0.000000e+00> : vector<16x256xf32>
    %14 = tpu.matmul %0, %13, %cst_19 {dimension_numbers = #tpu.dot_dimension_numbers<[1], [0], [0], [1], [0, 0, 1, 1], [], []>} : vector<16x16xbf16>, vector<16x256xbf16>, vector<16x256xf32> -> vector<16x256xf32>
    %15 = vector.broadcast %1 : vector<1x256xf32> to vector<16x256xf32>
    %16 = arith.addf %14, %15 : vector<16x256xf32>
    %cst_20 = arith.constant 0.000000e+00 : f32
    %17 = vector.broadcast %cst_20 : f32 to vector<16x256xf32>
    %18 = arith.maximumf %16, %17 : vector<16x256xf32>
    %19 = arith.truncf %18 : vector<16x256xf32> to vector<16x256xbf16>
    %c0_21 = arith.constant 0 : index
    %c0_22 = arith.constant 0 : index
    %20 = vector.load %arg9[%c0_21, %c0_22] : memref<16x256xbf16, #tpu.memory_space<vmem>>, vector<16x256xbf16>
    tpu.vector_store %arg9[%c0_21, %c0_22], %19 {strides = array<i32>} : memref<16x256xbf16, #tpu.memory_space<vmem>>, vector<16x256xbf16>,
    %c0_23 = arith.constant 0 : index
    %c0_24 = arith.constant 0 : index
    %21 = vector.load %arg9[%c0_23, %c0_24] : memref<16x256xbf16, #tpu.memory_space<vmem>>, vector<16x128xbf16>
    %c0_25 = arith.constant 0 : index
    %c0_26 = arith.constant 0 : index
    %22 = vector.load %arg5[%c0_25, %c0_26] : memref<128x128xbf16, #tpu.memory_space<vmem>>, vector<128x128xbf16>
    %cst_27 = arith.constant dense<0.000000e+00> : vector<16x128xf32>
    %23 = tpu.matmul %21, %22, %cst_27 {dimension_numbers = #tpu.dot_dimension_numbers<[1], [0], [0], [1], [0, 0, 1, 1], [], []>} : vector<16x128xbf16>, vector<128x128xbf16>, vector<16x128xf32> -> vector<16x128xf32>
    %24 = arith.truncf %23 : vector<16x128xf32> to vector<16x128xbf16>
    %c0_28 = arith.constant 0 : index
    %c0_29 = arith.constant 0 : index
    %25 = vector.load %arg8[%c0_28, %c0_29] : memref<16x256xbf16, #tpu.memory_space<vmem>>, vector<16x128xbf16>
    tpu.vector_store %arg8[%c0_28, %c0_29], %24 {strides = array<i32>} : memref<16x256xbf16, #tpu.memory_space<vmem>>, vector<16x128xbf16>,
    %c0_30 = arith.constant 0 : index
    %c128_31 = arith.constant 128 : index
    %26 = vector.load %arg9[%c0_30, %c128_31] : memref<16x256xbf16, #tpu.memory_space<vmem>>, vector<16x128xbf16>
    %c0_32 = arith.constant 0 : index
    %c0_33 = arith.constant 0 : index
    %27 = vector.load %arg5[%c0_32, %c0_33] : memref<128x128xbf16, #tpu.memory_space<vmem>>, vector<128x128xbf16>
    %cst_34 = arith.constant dense<0.000000e+00> : vector<16x128xf32>
    %28 = tpu.matmul %26, %27, %cst_34 {dimension_numbers = #tpu.dot_dimension_numbers<[1], [0], [0], [1], [0, 0, 1, 1], [], []>} : vector<16x128xbf16>, vector<128x128xbf16>, vector<16x128xf32> -> vector<16x128xf32>
    %29 = arith.truncf %28 : vector<16x128xf32> to vector<16x128xbf16>
    %c0_35 = arith.constant 0 : index
    %c128_36 = arith.constant 128 : index
    %30 = vector.load %arg8[%c0_35, %c128_36] : memref<16x256xbf16, #tpu.memory_space<vmem>>, vector<16x128xbf16>
    tpu.vector_store %arg8[%c0_35, %c128_36], %29 {strides = array<i32>} : memref<16x256xbf16, #tpu.memory_space<vmem>>, vector<16x128xbf16>,
    %c0_37 = arith.constant 0 : index
    %c0_38 = arith.constant 0 : index
    %31 = vector.load %arg8[%c0_37, %c0_38] : memref<16x256xbf16, #tpu.memory_space<vmem>>, vector<16x256xbf16>
    %cst_39 = arith.constant dense<0.000000e+00> : vector<16x256xf32>
    %32 = tpu.matmul %0, %31, %cst_39 {dimension_numbers = #tpu.dot_dimension_numbers<[1], [0], [0], [1], [0, 0, 1, 1], [], []>} : vector<16x16xbf16>, vector<16x256xbf16>, vector<16x256xf32> -> vector<16x256xf32>
    %33 = vector.broadcast %2 : vector<1x256xf32> to vector<16x256xf32>
    %34 = arith.addf %32, %33 : vector<16x256xf32>
    %cst_40 = arith.constant 0.000000e+00 : f32
    %35 = vector.broadcast %cst_40 : f32 to vector<16x256xf32>
    %36 = arith.maximumf %34, %35 : vector<16x256xf32>
    %c0_41 = arith.constant 0 : index
    %c0_42 = arith.constant 0 : index
    %37 = vector.load %arg7[%c0_41, %c0_42] : memref<16x256xf32, #tpu.memory_space<vmem>>, vector<16x256xf32>
    tpu.vector_store %arg7[%c0_41, %c0_42], %36 {strides = array<i32>} : memref<16x256xf32, #tpu.memory_space<vmem>>, vector<16x256xf32>,
    return
  }
  func.func @transform_0(%arg0: i32) -> (i32, i32) {
    %c0_i32 = arith.constant 0 : i32
    %c0_i32_0 = arith.constant 0 : i32
    %c0_i32_1 = arith.constant 0 : i32
    return %c0_i32, %c0_i32_0 : i32, i32
  }
  func.func @transform_1(%arg0: i32) -> (i32, i32) {
    %c0_i32 = arith.constant 0 : i32
    %c0_i32_0 = arith.constant 0 : i32
    %c0_i32_1 = arith.constant 0 : i32
    return %c0_i32, %c0_i32_0 : i32, i32
  }
  func.func @transform_2(%arg0: i32) -> (i32, i32) {
    %c0_i32 = arith.constant 0 : i32
    %c0_i32_0 = arith.constant 0 : i32
    %c0_i32_1 = arith.constant 0 : i32
    return %c0_i32, %c0_i32_0 : i32, i32
  }
  func.func @transform_3(%arg0: i32) -> (i32, i32) {
    %c0_i32 = arith.constant 0 : i32
    %c0_i32_0 = arith.constant 0 : i32
    %c0_i32_1 = arith.constant 0 : i32
    return %c0_i32, %c0_i32_0 : i32, i32
  }
  func.func @transform_4(%arg0: i32) -> (i32, i32) {
    %c0_i32 = arith.constant 0 : i32
    %c0_i32_0 = arith.constant 0 : i32
    %c0_i32_1 = arith.constant 0 : i32
    return %c0_i32, %c0_i32_0 : i32, i32
  }
  func.func @transform_5(%arg0: i32) -> (i32, i32) {
    %c0_i32 = arith.constant 0 : i32
    %c0_i32_0 = arith.constant 0 : i32
    %c0_i32_1 = arith.constant 0 : i32
    return %c0_i32, %c0_i32_0 : i32, i32
  }
  func.func @transform_6(%arg0: i32) -> (i32, i32) {
    %c0_i32 = arith.constant 0 : i32
    %c0_i32_0 = arith.constant 0 : i32
    %c0_i32_1 = arith.constant 0 : i32
    return %c0_i32, %c0_i32_0 : i32, i32
  }
}

</mosaic_0001>

<bundles_post_ra>
// kernel: gnn_forward.1
= control target key start
LH: loop header
LB: loop body
LE: loop exit
PB: predicated region body
PF: predicated region fallthrough
CT: control target
= control target key end

     0   :  { %v806_v0 = vmov 0.0   ;;  %vm807_vm0 = vmmov 0   ;;  %v808_v19 = vmov 0   ;;  %vm276_vm1 = vcmask 130048   ;;  %s1015_s2 = inlined_call_operand.vmem [shape: bf16[128,128], index: 2, kind: input, shape index: {}]   ;;  %s1016_s1 = inlined_call_operand.vmem [shape: bf16[16,256], index: 1, kind: input, shape index: {}]   ;;  %s1017_s0 = inlined_call_operand.vmem [shape: bf16[16,16], index: 0, kind: input, shape index: {}]   ;;  %s1018_s4 = inlined_call_operand.vmem [shape: bf16[128,128], index: 4, kind: input, shape index: {}]   ;;  %s1019_s3 = inlined_call_operand.vmem [shape: f32[1,256], index: 3, kind: input, shape index: {}]   ;;  %s1020_s5 = inlined_call_operand.vmem [shape: f32[1,256], index: 5, kind: input, shape index: {}]   ;;  %s1021_s6 = inlined_call_operand.vmem [shape: f32[16,256], index: 6, kind: output, shape index: {}]  }
   0x1   :  { %688 = vmatprep.subr.bf16.mxu0 %v806_v0  ;;  %708 = vmatprep.subr.bf16.mxu1 %v806_v0  ;;  %v771_v1 = vld [vmem:[%s1015_s2] sm:$0xff]   ;;  %v773_v3 = vld [vmem:[%s1015_s2 + $0x8] sm:$0xff]   ;;  %v775_v5 = vld [vmem:[%s1015_s2 + $0x10] sm:$0xff]   ;;  %v261_v47 = vlaneseq }
   0x2   :  { %v772_v2 = vld [vmem:[%s1015_s2] sm:$0xff]   ;;  %704 = vmatprep.mubr.msk.bf16.mxu0 %vm807_vm0, %v806_v0  ;;  %724 = vmatprep.mubr.msk.bf16.mxu1 %vm807_vm0, %v806_v0  ;;  %v774_v4 = vld [vmem:[%s1015_s2 + $0x8] sm:$0xff]   ;;  %v776_v6 = vld [vmem:[%s1015_s2 + $0x10] sm:$0xff]  }
   0x3   :  { %689 = vmatpush3.bf16.msra.mxu0 %v771_v1  ;;  %709 = vmatpush3.bf16.msra.mxu1 %v772_v2  ;;  %v777_v7 = vld [vmem:[%s1015_s2 + $0x18] sm:$0xff]   ;;  %v779_v9 = vld [vmem:[%s1015_s2 + $0x20] sm:$0xff]   ;;  %v781_v11 = vld [vmem:[%s1015_s2 + $0x28] sm:$0xff]   ;;  %v262_v48 = vshrl.u32 %v261_v47, 7 }
   0x4   :  { %690 = vmatprep.subr.bf16.mxu0 %v806_v0  ;;  %710 = vmatprep.subr.bf16.mxu1 %v806_v0  ;;  %v778_v8 = vld [vmem:[%s1015_s2 + $0x18] sm:$0xff]   ;;  %v780_v10 = vld [vmem:[%s1015_s2 + $0x20] sm:$0xff]   ;;  %v782_v12 = vld [vmem:[%s1015_s2 + $0x28] sm:$0xff]  }
   0x5   :  { %v783_v13 = vld [vmem:[%s1015_s2 + $0x30] sm:$0xff]   ;;  %v785_v15 = vld [vmem:[%s1015_s2 + $0x38] sm:$0xff]   ;;  %v787_v17 = vld [vmem:[%s1016_s1] ss:$8 sps:$4 sm:$0xff]   ;;  %v263_v49 = vsub.s32 0, %v262_v48  ;;  %v267_v51 = vsub.s32 1, %v262_v48 }
   0x6   :  { %v784_v14 = vld [vmem:[%s1015_s2 + $0x30] sm:$0xff]   ;;  %v786_v16 = vld [vmem:[%s1015_s2 + $0x38] sm:$0xff]   ;;  %v788_v18 = vld [vmem:[%s1016_s1 + $0x4] ss:$8 sps:$4 sm:$0xff]  }
   0x7   :  { %691 = vmatpush3.bf16.msra.mxu0 %v773_v3  ;;  %711 = vmatpush3.bf16.msra.mxu1 %v774_v4  ;;  %v790_v20 = vld [vmem:[%s1018_s4] sm:$0xff]   ;;  %v792_v21 = vld [vmem:[%s1018_s4 + $0x8] sm:$0xff]   ;;  %v794_v22 = vld [vmem:[%s1018_s4 + $0x10] sm:$0xff]  }
   0x8   :  { %692 = vmatprep.subr.bf16.mxu0 %v806_v0  ;;  %712 = vmatprep.subr.bf16.mxu1 %v806_v0  ;;  %v796_v23 = vld [vmem:[%s1018_s4 + $0x18] sm:$0xff]   ;;  %v798_v24 = vld [vmem:[%s1018_s4 + $0x20] sm:$0xff]   ;;  %v800_v25 = vld [vmem:[%s1018_s4 + $0x28] sm:$0xff]  }
   0x9   :  { %v949_v36 = vld [vmem:[%s1017_s0] sm:$0xff]   ;;  %v793_v38 = vld [vmem:[%s1018_s4 + $0x8] sm:$0xff]   ;;  %v795_v39 = vld [vmem:[%s1018_s4 + $0x10] sm:$0xff]  }
   0xa   :  { %v791_v37 = vld [vmem:[%s1018_s4] sm:$0xff]   ;;  %v797_v40 = vld [vmem:[%s1018_s4 + $0x18] sm:$0xff]   ;;  %v801_v42 = vld [vmem:[%s1018_s4 + $0x28] sm:$0xff]  }
   0xb   :  { %693 = vmatpush3.bf16.msra.mxu0 %v775_v5  ;;  %713 = vmatpush3.bf16.msra.mxu1 %v776_v6  ;;  %v799_v41 = vld [vmem:[%s1018_s4 + $0x20] sm:$0xff]   ;;  %v802_v43 = vld [vmem:[%s1018_s4 + $0x30] sm:$0xff]   ;;  %v804_v45 = vld [vmem:[%s1018_s4 + $0x38] sm:$0xff]  }
   0xc   :  { %694 = vmatprep.subr.bf16.mxu0 %v806_v0  ;;  %714 = vmatprep.subr.bf16.mxu1 %v806_v0  ;;  %v803_v44 = vld [vmem:[%s1018_s4 + $0x30] sm:$0xff]   ;;  %v805_v46 = vld [vmem:[%s1018_s4 + $0x38] sm:$0xff]   ;;  %v26_v50 = vld [vmem:[%s1019_s3] sm:$0x3] }
   0xd   :  { %v264_v52 = vrot.slane %v26_v50, %v263_v49  ;;  %v268_v53 = vrot.slane %v26_v50, %v267_v51 }
   0xf   :  { %695 = vmatpush3.bf16.msra.mxu0 %v777_v7  ;;  %715 = vmatpush3.bf16.msra.mxu1 %v778_v8 }
  0x10   :  { %696 = vmatprep.subr.bf16.mxu0 %v806_v0  ;;  %716 = vmatprep.subr.bf16.mxu1 %v806_v0 }
  0x13   :  { %697 = vmatpush3.bf16.msra.mxu0 %v779_v9  ;;  %717 = vmatpush3.bf16.msra.mxu1 %v780_v10 }
  0x14   :  { %698 = vmatprep.subr.bf16.mxu0 %v806_v0  ;;  %718 = vmatprep.subr.bf16.mxu1 %v806_v0 }
  0x17   :  { %699 = vmatpush3.bf16.msra.mxu0 %v781_v11  ;;  %719 = vmatpush3.bf16.msra.mxu1 %v782_v12 }
  0x18   :  { %700 = vmatprep.subr.bf16.mxu0 %v806_v0  ;;  %720 = vmatprep.subr.bf16.mxu1 %v806_v0 }
  0x1b   :  { %701 = vmatpush3.bf16.msra.mxu0 %v783_v13  ;;  %721 = vmatpush3.bf16.msra.mxu1 %v784_v14  ;;  %v27_v14 = vld [vmem:[%s1020_s5] sm:$0x3] }
  0x1c   :  { %702 = vmatprep.subr.bf16.mxu0 %v806_v0  ;;  %722 = vmatprep.subr.bf16.mxu1 %v806_v0 }
  0x1f   :  { %703 = vmatpush3.bf16.msra.mxu0 %v785_v15  ;;  %723 = vmatpush3.bf16.msra.mxu1 %v786_v16  ;;  %v553_v15 = vrot.slane %v27_v14, %v263_v49  ;;  %v557_v16 = vrot.slane %v27_v14, %v267_v51 }
  0x20   :  { %728 = vmatprep.subr.bf16.mxu1 %v806_v0 }
  0x22   :  { %705 = vmatmul.mubr.bf16.vlgmr.msra.gmra.mrb[0].mxu0 %v787_v17  ;;  %725 = vmatmul.mubr.bf16.vlgmr.msra.gmra.mrb[0].mxu1 %v788_v18 }
  0x23   :  { %744 = vmatprep.mubr.msk.bf16.mxu1 %vm807_vm0, %v806_v0  ;;  %312 = vmatprep.mubr.bf16.mxu0 %v808_v19 }
  0x24   :  { %729 = vmatpush3.bf16.msra.mxu1 %v790_v20 }
  0x25   :  { %730 = vmatprep.subr.bf16.mxu1 %v806_v0 }
  0x28   :  { %731 = vmatpush3.bf16.msra.mxu1 %v792_v21 }
  0x29   :  { %732 = vmatprep.subr.bf16.mxu1 %v806_v0 }
  0x2c   :  { %733 = vmatpush3.bf16.msra.mxu1 %v794_v22 }
  0x2d   :  { %734 = vmatprep.subr.bf16.mxu1 %v806_v0 }
  0x30   :  { %735 = vmatpush3.bf16.msra.mxu1 %v796_v23 }
  0x31   :  { %736 = vmatprep.subr.bf16.mxu1 %v806_v0 }
  0x34   :  { %737 = vmatpush3.bf16.msra.mxu1 %v798_v24 }
  0x35   :  { %738 = vmatprep.subr.bf16.mxu1 %v806_v0 }
  0x38   :  { %739 = vmatpush3.bf16.msra.mxu1 %v800_v25 }
  0x39   :  { %740 = vmatprep.subr.bf16.mxu1 %v806_v0 }
  0x3c   :  { %741 = vmatpush3.bf16.msra.mxu1 %v802_v43 }
  0x3d   :  { %742 = vmatprep.subr.bf16.mxu1 %v806_v0 }
  0x40   :  { %743 = vmatpush3.bf16.msra.mxu1 %v804_v45 }
  0xf5   :  { %v134_v26 = vpop.f32.mrb[0].mxu0  ;;  %v249_v27 = vpop.f32.mrb[0].mxu1 }
  0xf6   :  { %v706_v28 = vpop.f32.mrb[1].mxu0  ;;  %v726_v29 = vpop.f32.mrb[1].mxu1 }
  0xf7   :  { %v137_v30 = vpop.f32.mrb[2].mxu0  ;;  %v252_v32 = vpop.f32.mrb[2].mxu1 }
  0xf8   :  { %v141_v31 = vpack.c.bf16 %v137_v30, %v134_v26  ;;  %v707_v33 = vpop.f32.mrb[3].mxu0  ;;  %v256_v34 = vpack.c.bf16 %v252_v32, %v249_v27  ;;  %v727_v35 = vpop.f32.mrb[3].mxu1 }
  0xfa   :  { %280 = vmatprep.subr.bf16.mxu0 %v256_v34 }
  0xfb   :  { %281 = vmatpush1.bf16.msra.mxu0 %v141_v31 }
  0xfc   :  { %748 = vmatprep.subr.bf16.mxu0 %v806_v0 }
  0xfe   :  { %634 = vmatmul.mubr.msk.bf16.vlgmr.msra.gmra.mrb[4].mxu0 %vm276_vm1, %v949_v36 }
  0xff   :  { %749 = vmatpush3.bf16.msra.mxu0 %v791_v37  ;;  %764 = vmatprep.mubr.msk.bf16.mxu0 %vm807_vm0, %v806_v0 }
 0x100   :  { %750 = vmatprep.subr.bf16.mxu0 %v806_v0 }
 0x103   :  { %751 = vmatpush3.bf16.msra.mxu0 %v793_v38 }
 0x104   :  { %752 = vmatprep.subr.bf16.mxu0 %v806_v0 }
 0x107   :  { %753 = vmatpush3.bf16.msra.mxu0 %v795_v39 }
 0x108   :  { %754 = vmatprep.subr.bf16.mxu0 %v806_v0 }
 0x10b   :  { %755 = vmatpush3.bf16.msra.mxu0 %v797_v40 }
 0x10c   :  { %756 = vmatprep.subr.bf16.mxu0 %v806_v0 }
 0x10f   :  { %757 = vmatpush3.bf16.msra.mxu0 %v799_v41 }
 0x110   :  { %758 = vmatprep.subr.bf16.mxu0 %v806_v0 }
 0x113   :  { %759 = vmatpush3.bf16.msra.mxu0 %v801_v42 }
 0x114   :  { %760 = vmatprep.subr.bf16.mxu0 %v806_v0 }
 0x117   :  { %761 = vmatpush3.bf16.msra.mxu0 %v803_v44 }
 0x118   :  { %762 = vmatprep.subr.bf16.mxu0 %v806_v0 }
 0x11b   :  { %763 = vmatpush3.bf16.msra.mxu0 %v805_v46 }
 0x1d1   :  { %v314_v54 = vpop.f32.mrb[4].mxu0 }
 0x1d2   :  { %v315_v55 = vadd.f32 %v314_v54, %v264_v52  ;;  %v316_v56 = vpop.f32.mrb[5].mxu0 }
 0x1d3   :  { %v317_v57 = vadd.f32 %v316_v56, %v268_v53  ;;  %v318_v58 = vpop.f32.mrb[6].mxu0 }
 0x1d4   :  { %v319_v59 = vadd.f32 %v318_v58, %v264_v52  ;;  %v320_v60 = vpop.f32.mrb[7].mxu0  ;;  %v323_v62 = vmax.f32 %v315_v55, 0.0 }
 0x1d5   :  { %v321_v61 = vadd.f32 %v320_v60, %v268_v53  ;;  %v324_v0 = vmax.f32 %v317_v57, 0.0 }
 0x1d6   :  { %v325_v63 = vmax.f32 %v319_v59, 0.0 }
 0x1d7   :  { %v326_v1 = vmax.f32 %v321_v61, 0.0 }
 0x1d8   :  { %v327_v2 = vpack.c.bf16 %v325_v63, %v323_v62 }
 0x1d9   :  { %v328_v3 = vpack.c.bf16 %v326_v1, %v324_v0 }
 0x1da   :  { %745 = vmatmul.mubr.bf16.vlgmr.msra.gmra.mrb[4].mxu1 %v327_v2 }
 0x1db   :  { %765 = vmatmul.mubr.bf16.vlgmr.msra.gmra.mrb[8].mxu0 %v328_v3  ;;  %592 = vmatprep.mubr.bf16.mxu1 %v808_v19 }
 0x2ad   :  { %v430_v4 = vpop.f32.mrb[4].mxu1 }
 0x2ae   :  { %v746_v5 = vpop.f32.mrb[5].mxu1  ;;  %v538_v6 = vpop.f32.mrb[8].mxu0 }
 0x2af   :  { %v433_v7 = vpop.f32.mrb[6].mxu1  ;;  %v766_v8 = vpop.f32.mrb[9].mxu0 }
 0x2b0   :  { %v437_v9 = vpack.c.bf16 %v433_v7, %v430_v4  ;;  %v747_v10 = vpop.f32.mrb[7].mxu1  ;;  %v541_v11 = vpop.f32.mrb[10].mxu0 }
 0x2b1   :  { %v545_v12 = vpack.c.bf16 %v541_v11, %v538_v6  ;;  %v767_v13 = vpop.f32.mrb[11].mxu0 }
 0x2b3   :  { %560 = vmatprep.subr.bf16.mxu1 %v545_v12 }
 0x2b4   :  { %561 = vmatpush1.bf16.msra.mxu1 %v437_v9 }
 0x2b7   :  { %651 = vmatmul.mubr.msk.bf16.vlgmr.msra.gmra.mrb[8].mxu1 %vm276_vm1, %v949_v36 }
 0x38a   :  { %v594_v17 = vpop.f32.mrb[8].mxu1 }
 0x38b   :  { %v595_v18 = vadd.f32 %v594_v17, %v553_v15  ;;  %v596_v19 = vpop.f32.mrb[9].mxu1 }
 0x38c   :  { %v597_v20 = vadd.f32 %v596_v19, %v557_v16  ;;  %v598_v21 = vpop.f32.mrb[10].mxu1 }
 0x38d   :  { %v603_v22 = vmax.f32 %v595_v18, 0.0  ;;  %v599_v23 = vadd.f32 %v598_v21, %v553_v15  ;;  %v600_v24 = vpop.f32.mrb[11].mxu1 }
 0x38e   :  { %v604_v25 = vmax.f32 %v597_v20, 0.0  ;;  %v601_v26 = vadd.f32 %v600_v24, %v557_v16 }
 0x38f   :  { %607 = vst [vmem:[%s1021_s6] sm:$0xff] %v603_v22  ;;  %v605_v27 = vmax.f32 %v599_v23, 0.0 }
 0x390   :  { %608 = vst [vmem:[%s1021_s6 + $0x8] sm:$0xff] %v604_v25  ;;  %v606_v28 = vmax.f32 %v601_v26, 0.0 }
 0x391   :  { %609 = vst [vmem:[%s1021_s6 + $0x10] sm:$0xff] %v605_v27 }
 0x392   :  { %610 = vst [vmem:[%s1021_s6 + $0x18] sm:$0xff] %v606_v28 }

</bundles_post_ra>
